<compile_context>
chip_gen: v6e
topology: v6e:2x2x1
jax: 0.10.0
libtpu: 0.0.40
codegen_flags: <defaults>
</compile_context>

<pallas_src>
import jax
import jax.numpy as jnp
from jax.experimental import pallas as pl
from jax.experimental.pallas import tpu as pltpu


def _round_up(x, m):
    return ((x + m - 1) // m) * m


def _pick_nb(n, bytes_per_batch_row, budget_bytes=6 * 1024 * 1024):
    """Pick the batch block size NB.

    * Whole batch fits the budget -> one grid step (tiny inputs are overhead
      dominated; splitting buys nothing).
    * Otherwise: largest divisor of n whose block fits the budget, preferring
      divisors that give an EVEN number of grid steps (v7x shards the
      "parallel" batch axis across 2 TensorCores; odd step counts idle a core).
    """
    if n * bytes_per_batch_row <= budget_bytes:
        return n
    max_nb = max(1, budget_bytes // max(1, bytes_per_batch_row))
    divisors = [d for d in range(1, n + 1) if n % d == 0 and d <= max_nb]
    if not divisors:
        return 1
    even = [d for d in divisors if (n // d) % 2 == 0]
    pool = even if even else divisors
    return max(pool)


def squeeze_excite(x, w1, b1, w2, b2):
    """x: (N, C, H, W).  w1: (S, C), b1: (S,), w2: (C, S), b2: (C,)."""
    N, C, H, W = x.shape
    S = w1.shape[0]
    HW = H * W
    itemsize = x.dtype.itemsize

    # --- lane-dense spatial axis (pad HW up to a multiple of 128) -----------
    HW_pad = _round_up(HW, 128)
    x_flat = x.reshape(N, C, HW)
    if HW_pad != HW:
        x_flat = jnp.pad(x_flat, ((0, 0), (0, 0), (0, HW_pad - HW)))

    # --- pack parameters into one (8,128)-aligned fp32 slab -----------------
    # All regions start at column 0 and on sublane rows that are multiples of 8
    # so the kernel's static ref slices never cross tile boundaries.
    #   rows [0        : C      ], cols [0:S] : w1^T * (1/HW)   (C, S)
    #   row  [r_b1               ], cols [0:S] : b1              (1, S)
    #   rows [r_w2     : r_w2+S ], cols [0:C] : w2^T            (S, C)
    #   row  [r_b2               ], cols [0:C] : b2              (1, C)
    r_b1 = _round_up(C, 8)
    r_w2 = r_b1 + 8
    r_b2 = r_w2 + _round_up(S, 8)
    rows = r_b2 + 8
    cols = _round_up(max(C, S), 128)

    slab = jnp.zeros((rows, cols), jnp.float32)
    slab = slab.at[0:C, 0:S].set(w1.T.astype(jnp.float32) * (1.0 / HW))
    slab = slab.at[r_b1, 0:S].set(b1.astype(jnp.float32))
    slab = slab.at[r_w2:r_w2 + S, 0:C].set(w2.T.astype(jnp.float32))
    slab = slab.at[r_b2, 0:C].set(b2.astype(jnp.float32))

    # --- block sizing over the batch axis ------------------------------------
    nb = _pick_nb(N, C * HW_pad * itemsize)
    grid = (N // nb,)

    def kernel(x_ref, p_ref, o_ref):
        x_blk = x_ref[...]                                   # (nb, C, HW_pad)

        # Static ref slices of the aligned parameter slab (zero-cost views).
        w1t = p_ref[0:C, 0:S]                                # (C, S), has 1/HW
        b1r = p_ref[r_b1:r_b1 + 1, 0:S]                      # (1, S)
        w2t = p_ref[r_w2:r_w2 + S, 0:C]                      # (S, C)
        b2r = p_ref[r_b2:r_b2 + 1, 0:C]                      # (1, C)

        # Spatial reduction accumulated in fp32 (padded lanes are zero).
        sums = jnp.sum(x_blk, axis=-1, dtype=jnp.float32)    # (nb, C)

        # Squeeze (1x1 conv) + SiLU, already in (nb, .) orientation.
        h = jnp.dot(sums, w1t, preferred_element_type=jnp.float32) + b1r  # (nb, S)
        h = h * jax.nn.sigmoid(h)
        # Excite (1x1 conv) + Sigmoid gate.
        g = jnp.dot(h, w2t, preferred_element_type=jnp.float32) + b2r     # (nb, C)
        g = jax.nn.sigmoid(g)

        # Rescale in the native dtype (broadcast along the spatial/lane axis).
        scale = g[:, :, None].astype(x_blk.dtype)            # (nb, C, 1)
        o_ref[...] = (x_blk * scale).astype(o_ref.dtype)

    cost = pl.CostEstimate(
        flops=int(2 * N * C * HW_pad + 4 * N * S * C),
        transcendentals=int(N * (S + C)),
        bytes_accessed=int(2 * N * C * HW_pad * itemsize + rows * cols * 4),
    )

    out = pl.pallas_call(
        kernel,
        out_shape=jax.ShapeDtypeStruct((N, C, HW_pad), x.dtype),
        grid_spec=pltpu.PrefetchScalarGridSpec(
            num_scalar_prefetch=0,
            grid=grid,
            in_specs=[
                pl.BlockSpec((nb, C, HW_pad), lambda b: (b, 0, 0)),
                # Grid-constant index map: Pallas skips re-fetching the slab.
                pl.BlockSpec((rows, cols), lambda b: (0, 0)),
            ],
            out_specs=pl.BlockSpec((nb, C, HW_pad), lambda b: (b, 0, 0)),
        ),
        compiler_params=pltpu.CompilerParams(
            dimension_semantics=("parallel",),
            # 4 x ~6 MiB double-buffered x/out blocks + slab; above v5e's
            # 16 MiB default scoped VMEM, below v7x's 64 MiB physical VMEM.
            vmem_limit_bytes=48 * 1024 * 1024,
        ),
        cost_estimate=cost,
    )(x_flat, slab)

    if HW_pad != HW:
        out = out[:, :, :HW]
    return out.reshape(N, C, H, W)


def _reference(x, w1, b1, w2, b2):
    # Pure-JAX reference matching the PyTorch forward exactly.
    scale = jnp.mean(x, axis=(2, 3), keepdims=True)               # (N,C,1,1)
    scale = jnp.einsum('sc,ncij->nsij', w1, scale) + b1[None, :, None, None]
    scale = scale * jax.nn.sigmoid(scale)                         # SiLU
    scale = jnp.einsum('cs,nsij->ncij', w2, scale) + b2[None, :, None, None]
    scale = jax.nn.sigmoid(scale)
    return scale * x


if __name__ == "__main__":
    key = jax.random.PRNGKey(0)

    # Module config: SqueezeExcite(input_c=16, expand_c=8, se_ratio=0.25)
    input_c, expand_c, se_ratio = 16, 8, 0.25
    squeeze_c = int(input_c * se_ratio)          # 4

    N, H, W = 4, 16, 16
    kx, kw1, kb1, kw2, kb2 = jax.random.split(key, 5)

    x = jax.random.normal(kx, (N, expand_c, H, W), dtype=jnp.float32)
    # Deterministic synthetic 1x1-conv parameters (kernel dims squeezed).
    w1 = jax.random.normal(kw1, (squeeze_c, expand_c), dtype=jnp.float32) * 0.3
    b1 = jax.random.normal(kb1, (squeeze_c,), dtype=jnp.float32) * 0.1
    w2 = jax.random.normal(kw2, (expand_c, squeeze_c), dtype=jnp.float32) * 0.3
    b2 = jax.random.normal(kb2, (expand_c,), dtype=jnp.float32) * 0.1

    out = squeeze_excite(x, w1, b1, w2, b2)
    jax.block_until_ready(out)

    ref = _reference(x, w1, b1, w2, b2)
    assert jnp.allclose(out, ref, atol=1e-5, rtol=1e-5), "mismatch vs reference"

    print("KERNEL_OK")
</pallas_src>

<mosaic_0001>
module attributes {stable_mosaic.version = 11 : i64} {
  func.func @kernel(%arg0: i32, %arg1: memref<4x8x256xf32, #tpu.memory_space<vmem>>, %arg2: memref<32x128xf32, #tpu.memory_space<vmem>>, %arg3: memref<4x8x256xf32, #tpu.memory_space<vmem>>) attributes {dimension_semantics = [#tpu.dimension_semantics<parallel>], iteration_bounds = array<i64: 1>, scalar_prefetch = 0 : i64, scratch_operands = 0 : i64, tpu.core_type = #tpu.core_type<tc>, window_params = [{transform_indices = @transform_0, window_bounds = array<i64: 4, 8, 256>}, {pipeline_mode = #tpu.pipeline_mode<synchronous>, transform_indices = @transform_1, window_bounds = array<i64: 32, 128>}, {transform_indices = @transform_2, window_bounds = array<i64: 4, 8, 256>}]} {
    %c0 = arith.constant 0 : index
    %c0_0 = arith.constant 0 : index
    %c0_1 = arith.constant 0 : index
    %0 = vector.load %arg1[%c0, %c0_0, %c0_1] : memref<4x8x256xf32, #tpu.memory_space<vmem>>, vector<4x8x256xf32>
    %c0_2 = arith.constant 0 : index
    %c0_3 = arith.constant 0 : index
    %1 = vector.load %arg2[%c0_2, %c0_3] : memref<32x128xf32, #tpu.memory_space<vmem>>, vector<8x4xf32>
    %c8 = arith.constant 8 : index
    %c0_4 = arith.constant 0 : index
    %2 = vector.load %arg2[%c8, %c0_4] : memref<32x128xf32, #tpu.memory_space<vmem>>, vector<1x4xf32>
    %c16 = arith.constant 16 : index
    %c0_5 = arith.constant 0 : index
    %3 = vector.load %arg2[%c16, %c0_5] : memref<32x128xf32, #tpu.memory_space<vmem>>, vector<4x8xf32>
    %c24 = arith.constant 24 : index
    %c0_6 = arith.constant 0 : index
    %4 = vector.load %arg2[%c24, %c0_6] : memref<32x128xf32, #tpu.memory_space<vmem>>, vector<1x8xf32>
    %cst = arith.constant dense<0.000000e+00> : vector<4x8xf32>
    %5 = vector.multi_reduction <add>, %0, %cst [2] : vector<4x8x256xf32> to vector<4x8xf32>
    %cst_7 = arith.constant dense<0.000000e+00> : vector<4x4xf32>
    %6 = tpu.matmul %5, %1, %cst_7 {dimension_numbers = #tpu.dot_dimension_numbers<[1], [0], [0], [1], [0, 0, 1, 1], [], []>} : vector<4x8xf32>, vector<8x4xf32>, vector<4x4xf32> -> vector<4x4xf32>
    %7 = vector.broadcast %2 : vector<1x4xf32> to vector<4x4xf32>
    %8 = arith.addf %6, %7 : vector<4x4xf32>
    %9 = arith.negf %8 : vector<4x4xf32>
    %10 = math.exp %9 : vector<4x4xf32>
    %cst_8 = arith.constant 1.000000e+00 : f32
    %11 = vector.broadcast %cst_8 : f32 to vector<4x4xf32>
    %12 = arith.addf %11, %10 : vector<4x4xf32>
    %13 = arith.divf %11, %12 : vector<4x4xf32>
    %14 = arith.mulf %8, %13 : vector<4x4xf32>
    %cst_9 = arith.constant dense<0.000000e+00> : vector<4x8xf32>
    %15 = tpu.matmul %14, %3, %cst_9 {dimension_numbers = #tpu.dot_dimension_numbers<[1], [0], [0], [1], [0, 0, 1, 1], [], []>} : vector<4x4xf32>, vector<4x8xf32>, vector<4x8xf32> -> vector<4x8xf32>
    %16 = vector.broadcast %4 : vector<1x8xf32> to vector<4x8xf32>
    %17 = arith.addf %15, %16 : vector<4x8xf32>
    %18 = arith.negf %17 : vector<4x8xf32>
    %19 = math.exp %18 : vector<4x8xf32>
    %cst_10 = arith.constant 1.000000e+00 : f32
    %20 = vector.broadcast %cst_10 : f32 to vector<4x8xf32>
    %21 = arith.addf %20, %19 : vector<4x8xf32>
    %22 = arith.divf %20, %21 : vector<4x8xf32>
    %23 = vector.shape_cast %22 : vector<4x8xf32> to vector<4x8x1xf32>
    %24 = vector.broadcast %23 : vector<4x8x1xf32> to vector<4x8x256xf32>
    %25 = arith.mulf %0, %24 : vector<4x8x256xf32>
    %c0_11 = arith.constant 0 : index
    %c0_12 = arith.constant 0 : index
    %c0_13 = arith.constant 0 : index
    %26 = vector.load %arg3[%c0_11, %c0_12, %c0_13] : memref<4x8x256xf32, #tpu.memory_space<vmem>>, vector<4x8x256xf32>
    tpu.vector_store %arg3[%c0_11, %c0_12, %c0_13], %25 {strides = array<i32>} : memref<4x8x256xf32, #tpu.memory_space<vmem>>, vector<4x8x256xf32>,
    return
  }
  func.func @transform_0(%arg0: i32) -> (i32, i32, i32) {
    %c0_i32 = arith.constant 0 : i32
    %c0_i32_0 = arith.constant 0 : i32
    %c0_i32_1 = arith.constant 0 : i32
    return %arg0, %c0_i32, %c0_i32_0 : i32, i32, i32
  }
  func.func @transform_1(%arg0: i32) -> (i32, i32) {
    %c0_i32 = arith.constant 0 : i32
    %c0_i32_0 = arith.constant 0 : i32
    %c0_i32_1 = arith.constant 0 : i32
    return %c0_i32, %c0_i32_0 : i32, i32
  }
  func.func @transform_2(%arg0: i32) -> (i32, i32, i32) {
    %c0_i32 = arith.constant 0 : i32
    %c0_i32_0 = arith.constant 0 : i32
    %c0_i32_1 = arith.constant 0 : i32
    return %arg0, %c0_i32, %c0_i32_0 : i32, i32, i32
  }
}

</mosaic_0001>

<bundles_post_ra>
// kernel: tpu_custom_call.1
= control target key start
LH: loop header
LB: loop body
LE: loop exit
PB: predicated region body
PF: predicated region fallthrough
CT: control target
= control target key end

     0   :  { %7 = vsyncpa [#allocation3], 0  ;;  %s501_s0 = inlined_call_operand.hbm [shape: f32[4,8,256], index: 0, kind: input, shape index: {}]   ;;  %s502_s1 = inlined_call_operand.hbm [shape: f32[32,128], index: 1, kind: input, shape index: {}]   ;;  %s503_s2 = inlined_call_operand.hbm [shape: f32[4,8,256], index: 2, kind: output, shape index: {}]  }
   0x1   :  { %8 = vsyncpa [#allocation6], 0 }
   0x2   :  { %9 = vsyncpa [#allocation4], 0  ;;  %s430_s9 = smov [#allocation2]  }
   0x3   :  { %s15_s10 = sshll.u32 %s430_s9, 4  ;;  %s16_s10 = int_to_ptr.vmem [resolvable:$true] %s15_s10 }
   0x4   :  { %s372_s11 = scalar_lea.vmem %s16_s10, 1024  ;;  %p377_p1 = scmp.lt.s32.totalorder %s16_s10, %s16_s10 }
   0x5   :  { %p373_p0 = scmp.ne.s32.totalorder %s16_s10, %s372_s11  ;;  %p378_p2 = scmp.lt.s32.totalorder %s372_s11, %s372_s11 }
   0x7   :  { %p379_p3 = por %p378_p2, %p377_p1 }
   0x9   :  { %p380_p4 = pnand %p379_p3, %p373_p0 }
   0xb   :  { %383 = shalt.err (!%p380_p4)
}
   0xc   :  { %s431_s12 = smov 256   ;;  %s432_s13 = smov 16  }
   0xd   :  { %21 = dma.hbm_to_vmem [thread:$0]  %s501_s0, 1024, %s16_s10, [#allocation3], %s431_s12, %s431_s12, %s432_s13  }
   0xe   :  { %s433_s16 = smov [#allocation5]  }
   0xf   :  { %s27_s17 = sshll.u32 %s433_s16, 4  ;;  %s28_s17 = int_to_ptr.vmem [resolvable:$true] %s27_s17 }
  0x10   :  { %s392_s18 = scalar_lea.vmem %s28_s17, 512  ;;  %p397_p6 = scmp.lt.s32.totalorder %s28_s17, %s28_s17 }
  0x11   :  { %p393_p5 = scmp.ne.s32.totalorder %s28_s17, %s392_s18  ;;  %p398_p7 = scmp.lt.s32.totalorder %s392_s18, %s392_s18 }
  0x13   :  { %p399_p8 = por %p398_p7, %p397_p6 }
  0x15   :  { %p400_p9 = pnand %p399_p8, %p393_p5 }
  0x17   :  { %403 = shalt.err (!%p400_p9)
}
  0x18   :  { %s434_s19 = smov 128   ;;  %s435_s20 = smov 8  }
  0x19   :  { %33 = dma.hbm_to_vmem [thread:$0]  %s502_s1, 512, %s28_s17, [#allocation6], %s434_s19, %s434_s19, %s435_s20  }
  0x1a   :  { %424 = dma.done.wait [#allocation3], 1024  }
  0x1b   :  { %425 = vsyncadd [#allocation3], 4294966272 }
  0x1c   :  { %426 = dma.done.wait [#allocation6], 512  }
  0x1d   :  { %427 = vsyncadd [#allocation6], 4294966784  ;;  %v463_v0 = vld [vmem:[#allocation2] sm:$0xff]  ;;  %v465_v1 = vld [vmem:[#allocation2 + $0x8] sm:$0xff]  ;;  %v436_v13 = vmov 0.0   ;;  %vm437_vm0 = vmmov 0   ;;  %v72_v14 = vlaneseq }
  0x1e   :  { %v467_v2 = vld [vmem:[#allocation2 + $0x20] sm:$0xff]  ;;  %v52_v3 = vadd.f32 %v465_v1, %v463_v0  ;;  %v471_v4 = vld [vmem:[#allocation2 + $0x28] sm:$0xff]  ;;  %v473_v5 = vld [vmem:[#allocation2 + $0x10] sm:$0xff]  ;;  %337 = vmatprep.subr.mxu0 %v436_v13  ;;  %339 = vmatprep.mubr.msk.f32.mxu0 %vm437_vm0, %v436_v13  ;;  %vm90_vm1 = vcmask 1041409   ;;  %vm92_vm2 = vcmask 1042434   ;;  %vm94_vm3 = vcmask 1043459  }
  0x1f   :  { %v475_v6 = vld [vmem:[#allocation2 + $0x18] sm:$0xff]  ;;  %v58_v7 = vadd.f32 %v471_v4, %v467_v2  ;;  %v479_v8 = vld [vmem:[#allocation2 + $0x30] sm:$0xff]  ;;  %v48_v12 = vld [vmem:[#allocation5] sm:$0xff]  ;;  %342 = vmatprep.subr.mxu1 %v436_v13  ;;  %344 = vmatprep.mubr.msk.f32.mxu1 %vm437_vm0, %v436_v13  ;;  %v73_v15 = vand.u32 127, %v72_v14  ;;  %v75_v16 = vshrl.u32 %v72_v14, 7  ;;  %vm96_vm4 = vcmask 64512  }
  0x20   :  { %v481_v9 = vld [vmem:[#allocation2 + $0x38] sm:$0xff]  ;;  %53 = vadd.xlane.f32.xlu0 %v52_v3  ;;  %v55_v10 = vadd.f32 %v475_v6, %v473_v5  ;;  %338 = vmatpush3.msra.mxu0 %v48_v12  ;;  %v50_v29 = vld [vmem:[#allocation5 + $0x10] sm:$0xf]  ;;  %vm184_vm5 = vcmask 1043456   ;;  %v326_v30 = vld [vmem:[#allocation5 + $0x8] ss:$0 sm:$0xff] }
  0x21   :  { %59 = vadd.xlane.f32.xlu1 %v58_v7  ;;  %v61_v11 = vadd.f32 %v481_v9, %v479_v8  ;;  %v76_v18 = vsub.s32 %v73_v15, %v75_v16  ;;  %343 = vmatpush3.msk.msra.mxu1 %vm184_vm5, %v50_v29  ;;  %vm180_vm6 = vcmask 31744   ;;  %v329_v39 = vld [vmem:[#allocation5 + $0x18] ss:$0 sm:$0xff]  ;;  %v273_v46 = vsub.s32 1, %v75_v16  ;;  %s438_s0 = smov [#allocation7]  }
  0x22   :  { %v266_v47 = vsub.s32 0, %v75_v16  ;;  %v280_v51 = vsub.s32 2, %v75_v16  ;;  %v287_v53 = vsub.s32 3, %v75_v16  ;;  %s313_s1 = sshll.u32 %s438_s0, 4  ;;  %s314_s1 = int_to_ptr.vmem [resolvable:$true] %s313_s1 }
  0x23   :  { %s404_s23 = scalar_lea.vmem %s314_s1, 1024  ;;  %p409_p11 = scmp.lt.s32.totalorder %s314_s1, %s314_s1 }
  0x24   :  { %56 = vadd.xlane.f32.xlu0 %v55_v10  ;;  %p405_p10 = scmp.ne.s32.totalorder %s314_s1, %s404_s23  ;;  %p410_p12 = scmp.lt.s32.totalorder %s404_s23, %s404_s23 }
  0x25   :  { %62 = vadd.xlane.f32.xlu1 %v61_v11 }
  0x26   :  { %p411_p13 = por %p410_p12, %p409_p11 }
  0x28   :  { %p412_p0 = pnand %p411_p13, %p405_p10 }
  0xa9   :  { %v54_v17 = vpop.xlane.xlu0 %53 }
  0xaa   :  { %v60_v19 = vpop.xlane.xlu1 %59  ;;  %v77_v21 = vrot.slane %v54_v17, %v76_v18 }
  0xab   :  { %v85_v24 = vrot.slane %v60_v19, %v76_v18 }
  0xad   :  { %v57_v20 = vpop.xlane.xlu0 %56 }
  0xae   :  { %v81_v22 = vrot.slane %v57_v20, %v76_v18  ;;  %v63_v23 = vpop.xlane.xlu1 %62 }
  0xaf   :  { %v89_v25 = vrot.slane %v63_v23, %v76_v18 }
  0xb0   :  { %v91_v26 = vsel %vm90_vm1, %v81_v22, %v77_v21 }
  0xb1   :  { %v93_v27 = vsel %vm92_vm2, %v85_v24, %v91_v26 }
  0xb2   :  { %v95_v28 = vsel %vm94_vm3, %v89_v25, %v93_v27 }
  0xb3   :  { %340 = vmatmul.mubr.msk.f32.vlgmr.msra.gmra.mxu0 %vm96_vm4, %v95_v28 }
 0x173   :  { %v165_v31 = vpop.f32.mrf.mxu0 }
 0x174   :  { %v166_v32 = vadd.f32 %v326_v30, %v165_v31 }
 0x175   :  { %v341_v33 = vpop.f32.mrf.mxu0 }
 0x176   :  { %v328_v34 = vmul.f32 -1.442695, %v166_v32 }
 0x178   :  { %356 = vpow2.f32 %v328_v34 }
 0x185   :  { %v357_v35 = vpop.eup %356 }
 0x186   :  { %v172_v36 = vadd.f32 1.0, %v357_v35 }
 0x188   :  { %358 = vrcp.f32 %v172_v36 }
 0x195   :  { %v359_v37 = vpop.eup %358 }
 0x196   :  { %v175_v38 = vmul.f32 %v359_v37, %v166_v32 }
 0x198   :  { %345 = vmatmul.mubr.msk.f32.vlgmr.msra.gmra.mxu1 %vm180_vm6, %v175_v38 }
 0x258   :  { %v254_v40 = vpop.f32.mrf.mxu1 }
 0x259   :  { %v255_v41 = vadd.f32 %v329_v39, %v254_v40 }
 0x25a   :  { %v346_v42 = vpop.f32.mrf.mxu1 }
 0x25b   :  { %v332_v43 = vmul.f32 -1.442695, %v255_v41 }
 0x25d   :  { %360 = vpow2.f32 %v332_v43 }
 0x26a   :  { %v361_v44 = vpop.eup %360 }
 0x26b   :  { %v261_v45 = vadd.f32 1.0, %v361_v44 }
 0x26d   :  { %362 = vrcp.f32 %v261_v45 }
 0x27a   :  { %v363_v48 = vpop.eup %362 }
 0x27b   :  { %v274_v49 = vrot.slane %v363_v48, %v273_v46  ;;  %v267_v50 = vrot.slane %v363_v48, %v266_v47  ;;  %v281_v52 = vrot.slane %v363_v48, %v280_v51  ;;  %v288_v54 = vrot.slane %v363_v48, %v287_v53 }
 0x27d   :  { %276 = vbcast.lane.b32.xlu1 %v274_v49, 256  ;;  %269 = vbcast.lane.b32.xlu0 %v267_v50, 256 }
 0x281   :  { %283 = vbcast.lane.b32.xlu1 %v281_v52, 256 }
 0x285   :  { %290 = vbcast.lane.b32.xlu1 %v288_v54, 256 }
 0x2ef   :  { %v277_v55 = vpop.permute.xlu1 %276  ;;  %v270_v56 = vpop.permute.xlu0 %269 }
 0x2f0   :  { %v294_v57 = vmul.f32 %v277_v55, %v473_v5  ;;  %v295_v58 = vmul.f32 %v277_v55, %v475_v6  ;;  %v292_v59 = vmul.f32 %v270_v56, %v463_v0  ;;  %v293_v60 = vmul.f32 %v270_v56, %v465_v1 }
 0x2f2   :  { %302 = vst [vmem:[#allocation7 + $0x10] sm:$0xff] %v294_v57  ;;  %303 = vst [vmem:[#allocation7 + $0x18] sm:$0xff] %v295_v58 }
 0x2f3   :  { %300 = vst [vmem:[#allocation7] sm:$0xff] %v292_v59  ;;  %301 = vst [vmem:[#allocation7 + $0x8] sm:$0xff] %v293_v60  ;;  %v284_v61 = vpop.permute.xlu1 %283 }
 0x2f4   :  { %v296_v62 = vmul.f32 %v284_v61, %v467_v2  ;;  %v297_v63 = vmul.f32 %v284_v61, %v471_v4 }
 0x2f6   :  { %304 = vst [vmem:[#allocation7 + $0x20] sm:$0xff] %v296_v62  ;;  %305 = vst [vmem:[#allocation7 + $0x28] sm:$0xff] %v297_v63 }
 0x2f7   :  { %v291_v3 = vpop.permute.xlu1 %290 }
 0x2f8   :  { %v298_v5 = vmul.f32 %v291_v3, %v479_v8  ;;  %v299_v0 = vmul.f32 %v291_v3, %v481_v9 }
 0x2fa   :  { %306 = vst [vmem:[#allocation7 + $0x30] sm:$0xff] %v298_v5  ;;  %307 = vst [vmem:[#allocation7 + $0x38] sm:$0xff] %v299_v0 }
 0x2fb   :  { %415 = shalt.err (!%p412_p0)
}
 0x2fc   :  { %319 = dma.vmem_to_hbm [thread:$0]  %s314_s1, 1024, %s503_s2, [#allocation4], %s431_s12, %s431_s12, %s432_s13  }
 0x2fd   :  { %428 = dma.done.wait [#allocation4], 1024  }
 0x2fe   :  { %429 = vsyncadd [#allocation4], 4294966272 }
 0x2ff   :  { %323 = vsyncpa [#allocation3], 1 }
 0x300   :  { %324 = vsyncpa [#allocation6], 1 }
 0x301   :  { %325 = vsyncpa [#allocation4], 1 }

</bundles_post_ra>
